<compile_context>
chip_gen: v7x
topology: tpu7x:2x2x1
jax: 0.10.0
libtpu: 0.0.40
codegen_flags: <defaults>
</compile_context>

<pallas_src>
import functools

import jax
import jax.numpy as jnp
from jax.experimental import pallas as pl
from jax.experimental.pallas import tpu as pltpu


def _round_up(x, m):
    return (x + m - 1) // m * m


def _vmem_limit_bytes():
    """Chip-aware VMEM limit: ~3/4 of physical capacity, capped at 110 MiB."""
    try:
        cap = pltpu.get_tpu_info().vmem_capacity_bytes
    except Exception:  # pragma: no cover - conservative (v7x-sized) fallback
        cap = 64 << 20
    return min(int(cap) * 3 // 4, 110 << 20)


def _choose_tiles(B, T, Din, Dv, Dout, bpe_in, vmem_limit):
    """Pick (block_b, block_t) for the (batch, seq) grid."""
    B8 = _round_up(B, 8)

    # Bytes per (batch, seq) element of one grid step:
    #   query/values input streams (double-buffered by the pipeline),
    #   f32 intermediates (h, score*values product, logits/score),
    #   score output (double-buffered, f32).
    per_bt = 2 * (Din + Dv) * bpe_in + (Dout + Dv + 2) * 4 + 2 * 4
    resident = Din * Dout * bpe_in + 4 * Dout * 4 + 4 * Dv * 4  # weights + ctx/acc
    budget = int(vmem_limit * 0.75) - resident
    rows = max(8 * min(T, 128), budget // per_bt)  # (b, t) elements per step

    if rows >= 8 * T:
        # Whole sequence per step; tile the batch only.
        block_t = T
        block_b = max(8, min(B8, (rows // T) // 8 * 8))
    else:
        # Long sequence: tile T in lane-dense multiples of 128 and accumulate.
        block_b = 8
        block_t = max(128, (rows // block_b) // 128 * 128)
        block_t = min(block_t, _round_up(T, 128))

    # v7x megacore: make sure the "parallel" batch axis has >= 2 grid steps so
    # both TensorCores get work (harmless on single-TC v5e/v6e).
    if B8 >= 16:
        block_b = max(8, min(block_b, (B8 // 2) // 8 * 8))

    return block_b, block_t


def _make_kernel(T, t_padded):
    def kernel(q_ref, vals_ref, w1_ref, b1_ref, v_ref, bv_ref,
               ctx_ref, score_ref, num_acc, den_acc):
        bb, bt, din = q_ref.shape
        dout = w1_ref.shape[1]
        t_idx = pl.program_id(1)

        @pl.when(t_idx == 0)
        def _():
            num_acc[...] = jnp.zeros_like(num_acc)
            den_acc[...] = jnp.zeros_like(den_acc)

        # ---- Linear(W1) + tanh: one MXU matmul over bb*bt rows (f32 acc) ----
        # TODO(synk): in the whole-T path with T not a multiple of 8 (f32) /
        # 16 (bf16) this reshape pays a VMEM relayout; T tiles are 128-aligned
        # so the long-sequence path is already layout-clean.
        q2 = q_ref[...].reshape(bb * bt, din)
        h = jnp.tanh(
            jnp.dot(q2, w1_ref[...], preferred_element_type=jnp.float32)
            + b1_ref[...].astype(jnp.float32))
        h = h.reshape(bb, bt, dout)

        # ---- Linear(V), out_features == 1: VPU multiply + lane reduce -------
        # Lane-dense (bb, bt) logits/score: full vreg utilisation for the EUP
        # sigmoid and an unmasked, relayout-free score store.
        logits = jnp.sum(h * v_ref[...].astype(jnp.float32), axis=-1) + bv_ref[0, 0]
        score = jax.nn.sigmoid(logits)                            # (bb, bt) f32

        if t_padded:
            pos = t_idx * bt + jax.lax.broadcasted_iota(jnp.int32, (bb, bt), 1)
            score = jnp.where(pos < T, score, 0.0)  # zero padded seq positions

        score_ref[...] = score.astype(score_ref.dtype)

        # ---- accumulate weighted sum of values and the normalizer -----------
        den_acc[...] += jnp.sum(score, axis=1, keepdims=True)                 # (bb, 1)
        num_acc[...] += jnp.sum(score[:, :, None] * vals_ref[...].astype(jnp.float32),
                                axis=1)                                        # (bb, Dv)

        @pl.when(t_idx == pl.num_programs(1) - 1)
        def _():
            # Exact division (tiny operand); normalize the context, not scores.
            ctx_ref[...] = (num_acc[...] / den_acc[...]).astype(ctx_ref.dtype)

    return kernel


def self_attention(query, values, w1, b1, v, bv, *,
                   block_b=None, block_t=None, use_bf16_inputs=False):
    """query (B,T,Din), values (B,T,Dv), w1 (Din,Dout), b1 (Dout,), v (Dout,), bv scalar.

    use_bf16_inputs=True halves the dominant HBM streams (recommended on the
    low-bandwidth v5e/v6e chips); matmul accumulation stays f32.
    """
    B, T, Din = query.shape
    Dv = values.shape[-1]
    Dout = w1.shape[1]

    if use_bf16_inputs:
        query = query.astype(jnp.bfloat16)
        values = values.astype(jnp.bfloat16)
        w1 = jnp.asarray(w1, jnp.bfloat16)
    else:
        w1 = jnp.asarray(w1, jnp.float32)
    bpe_in = 2 if use_bf16_inputs else 4

    # Small params as 2-D slabs (constant index_map -> VMEM-resident) + SMEM bv.
    b1_2d = jnp.asarray(b1, jnp.float32).reshape(1, Dout)
    v_2d = jnp.asarray(v, jnp.float32).reshape(1, Dout)
    bv_2d = jnp.asarray(bv, jnp.float32).reshape(1, 1)

    vmem_limit = _vmem_limit_bytes()
    auto_b, auto_t = _choose_tiles(B, T, Din, Dv, Dout, bpe_in, vmem_limit)

    if block_b is None:
        block_b = auto_b
    else:
        block_b = max(8, min(_round_up(block_b, 8), _round_up(B, 8)))
    if block_t is None:
        block_t = auto_t
    elif block_t >= T:
        block_t = T
    else:
        block_t = max(128, _round_up(block_t, 128))   # lane-dense T tiles only

    B_pad = _round_up(B, block_b)
    T_pad = _round_up(T, block_t)
    if (B_pad, T_pad) != (B, T):
        query = jnp.pad(query, ((0, B_pad - B), (0, T_pad - T), (0, 0)))
        values = jnp.pad(values, ((0, B_pad - B), (0, T_pad - T), (0, 0)))

    grid = (B_pad // block_b, T_pad // block_t)
    kernel = _make_kernel(T, T_pad != T)
    smem = pltpu.MemorySpace.SMEM

    ctx, score = pl.pallas_call(
        kernel,
        grid=grid,
        in_specs=[
            pl.BlockSpec((block_b, block_t, Din), lambda b, t: (b, t, 0)),  # query tile
            pl.BlockSpec((block_b, block_t, Dv), lambda b, t: (b, t, 0)),   # values tile
            pl.BlockSpec((Din, Dout), lambda b, t: (0, 0)),                 # W1 (resident)
            pl.BlockSpec((1, Dout), lambda b, t: (0, 0)),                   # b1 (resident)
            pl.BlockSpec((1, Dout), lambda b, t: (0, 0)),                   # V row (resident)
            pl.BlockSpec(memory_space=smem),                                # bv scalar (SMEM)
        ],
        out_specs=(
            pl.BlockSpec((block_b, Dv), lambda b, t: (b, 0)),       # context (resident over t)
            pl.BlockSpec((block_b, block_t), lambda b, t: (b, t)),  # lane-dense score
        ),
        out_shape=(
            jax.ShapeDtypeStruct((B_pad, Dv), jnp.float32),
            jax.ShapeDtypeStruct((B_pad, T_pad), jnp.float32),
        ),
        scratch_shapes=[
            pltpu.VMEM((block_b, Dv), jnp.float32),   # sum(score * values) accumulator
            pltpu.VMEM((block_b, 1), jnp.float32),    # sum(score) accumulator
        ],
        compiler_params=pltpu.CompilerParams(
            dimension_semantics=("parallel", "arbitrary"),  # batch sharded on v7x megacore
            vmem_limit_bytes=vmem_limit,
        ),
    )(query, values, w1, b1_2d, v_2d, bv_2d)

    return ctx[:B], score[:B, :T].reshape(B, T, 1)


def _reference(query, values, w1, b1, v, bv):
    h = jnp.tanh(query @ w1 + b1)
    score = jax.nn.sigmoid(h @ v.reshape(-1, 1) + bv)          # (B, T, 1)
    attn_w = score / jnp.sum(score, axis=1, keepdims=True)
    ctx = jnp.sum(attn_w * values, axis=1)
    return ctx, score


def _make_inputs(key, B, T, Din, Dout, Dv):
    kq, kv, kw1, kb1, kvv, kbv = jax.random.split(key, 6)
    query = jax.random.normal(kq, (B, T, Din), dtype=jnp.float32)
    values = jax.random.normal(kv, (B, T, Dv), dtype=jnp.float32)
    w1 = jax.random.normal(kw1, (Din, Dout), dtype=jnp.float32) * 0.1
    b1 = jax.random.normal(kb1, (Dout,), dtype=jnp.float32) * 0.1
    v = jax.random.normal(kvv, (Dout,), dtype=jnp.float32) * 0.1
    bv = jax.random.normal(kbv, (), dtype=jnp.float32) * 0.1
    return query, values, w1, b1, v, bv


if __name__ == "__main__":
    key = jax.random.PRNGKey(0)

    # ---- Case 1: module-sized shapes, whole-T path --------------------------
    B, T, Din, Dout, Dv = 16, 8, 32, 16, 32
    query, values, w1, b1, v, bv = _make_inputs(key, B, T, Din, Dout, Dv)
    ctx_ref, score_ref = _reference(query, values, w1, b1, v, bv)

    ctx, score = self_attention(query, values, w1, b1, v, bv)
    jax.block_until_ready((ctx, score))
    assert ctx.shape == (B, Dv) and score.shape == (B, T, 1)
    assert jnp.allclose(score, score_ref, atol=2e-5, rtol=2e-5)
    assert jnp.allclose(ctx, ctx_ref, atol=2e-4, rtol=2e-4)

    # ---- Case 2: ragged batch + T-tiled accumulation path (padding/masking) --
    B2, T2 = 10, 160
    q2, v2, w1b, b1b, vb, bvb = _make_inputs(jax.random.PRNGKey(1), B2, T2, Din, Dout, Dv)
    ctx_ref2, score_ref2 = _reference(q2, v2, w1b, b1b, vb, bvb)
    ctx2, score2 = self_attention(q2, v2, w1b, b1b, vb, bvb, block_t=128)
    jax.block_until_ready((ctx2, score2))
    assert ctx2.shape == (B2, Dv) and score2.shape == (B2, T2, 1)
    assert jnp.allclose(score2, score_ref2, atol=2e-5, rtol=2e-5)
    assert jnp.allclose(ctx2, ctx_ref2, atol=2e-4, rtol=2e-4)

    # ---- Case 3: bf16 input streams (bandwidth path on v5e/v6e) --------------
    ctx_bf, score_bf = self_attention(query, values, w1, b1, v, bv,
                                      use_bf16_inputs=True)
    jax.block_until_ready((ctx_bf, score_bf))
    assert jnp.allclose(score_bf, score_ref, atol=5e-2, rtol=5e-2)
    assert jnp.allclose(ctx_bf, ctx_ref, atol=5e-2, rtol=5e-2)

    print("KERNEL_OK")
</pallas_src>

<mosaic_0001>
module attributes {stable_mosaic.version = 11 : i64} {
  func.func @kernel(%arg0: i32, %arg1: i32, %arg2: memref<8x8x32xf32, #tpu.memory_space<vmem>>, %arg3: memref<8x8x32xf32, #tpu.memory_space<vmem>>, %arg4: memref<32x16xf32, #tpu.memory_space<vmem>>, %arg5: memref<1x16xf32, #tpu.memory_space<vmem>>, %arg6: memref<1x16xf32, #tpu.memory_space<vmem>>, %arg7: memref<1x1xf32, #tpu.memory_space<smem>>, %arg8: memref<8x32xf32, #tpu.memory_space<vmem>>, %arg9: memref<8x8xf32, #tpu.memory_space<vmem>>, %arg10: memref<8x32xf32, #tpu.memory_space<vmem>>, %arg11: memref<8x1xf32, #tpu.memory_space<vmem>>) attributes {dimension_semantics = [#tpu.dimension_semantics<parallel>, #tpu.dimension_semantics<arbitrary>], iteration_bounds = array<i64: 2, 1>, scalar_prefetch = 0 : i64, scratch_operands = 2 : i64, tpu.core_type = #tpu.core_type<tc>, window_params = [{transform_indices = @transform_0, window_bounds = array<i64: 8, 8, 32>}, {transform_indices = @transform_1, window_bounds = array<i64: 8, 8, 32>}, {pipeline_mode = #tpu.pipeline_mode<synchronous>, transform_indices = @transform_2, window_bounds = array<i64: 32, 16>}, {pipeline_mode = #tpu.pipeline_mode<synchronous>, transform_indices = @transform_3, window_bounds = array<i64: 1, 16>}, {pipeline_mode = #tpu.pipeline_mode<synchronous>, transform_indices = @transform_4, window_bounds = array<i64: 1, 16>}, {transform_indices = @transform_5, window_bounds = array<i64: 1, 1>}, {transform_indices = @transform_6, window_bounds = array<i64: 8, 32>}, {transform_indices = @transform_7, window_bounds = array<i64: 8, 8>}]} {
    %c0_i32 = arith.constant 0 : i32
    %0 = arith.cmpi eq, %arg1, %c0_i32 : i32
    %1 = arith.extui %0 : i1 to i32
    %c0_i32_0 = arith.constant 0 : i32
    %2 = arith.cmpi ne, %1, %c0_i32_0 : i32
    scf.if %2 {
      %cst_30 = arith.constant 0.000000e+00 : f32
      %42 = vector.broadcast %cst_30 : f32 to vector<8x32xf32>
      %c0_31 = arith.constant 0 : index
      %c0_32 = arith.constant 0 : index
      %43 = vector.load %arg10[%c0_31, %c0_32] : memref<8x32xf32, #tpu.memory_space<vmem>>, vector<8x32xf32>
      tpu.vector_store %arg10[%c0_31, %c0_32], %42 {strides = array<i32>} : memref<8x32xf32, #tpu.memory_space<vmem>>, vector<8x32xf32>,
      %cst_33 = arith.constant 0.000000e+00 : f32
      %44 = vector.broadcast %cst_33 : f32 to vector<8x1xf32>
      %c0_34 = arith.constant 0 : index
      %c0_35 = arith.constant 0 : index
      %45 = vector.load %arg11[%c0_34, %c0_35] : memref<8x1xf32, #tpu.memory_space<vmem>>, vector<8x1xf32>
      tpu.vector_store %arg11[%c0_34, %c0_35], %44 {strides = array<i32>} : memref<8x1xf32, #tpu.memory_space<vmem>>, vector<8x1xf32>,
    } else {
    }
    %c0 = arith.constant 0 : index
    %c0_1 = arith.constant 0 : index
    %c0_2 = arith.constant 0 : index
    %3 = vector.load %arg2[%c0, %c0_1, %c0_2] : memref<8x8x32xf32, #tpu.memory_space<vmem>>, vector<8x8x32xf32>
    %4 = vector.shape_cast %3 : vector<8x8x32xf32> to vector<64x32xf32>
    %c0_3 = arith.constant 0 : index
    %c0_4 = arith.constant 0 : index
    %5 = vector.load %arg4[%c0_3, %c0_4] : memref<32x16xf32, #tpu.memory_space<vmem>>, vector<32x16xf32>
    %cst = arith.constant dense<0.000000e+00> : vector<64x16xf32>
    %6 = tpu.matmul %4, %5, %cst {dimension_numbers = #tpu.dot_dimension_numbers<[1], [0], [0], [1], [0, 0, 1, 1], [], []>} : vector<64x32xf32>, vector<32x16xf32>, vector<64x16xf32> -> vector<64x16xf32>
    %c0_5 = arith.constant 0 : index
    %c0_6 = arith.constant 0 : index
    %7 = vector.load %arg5[%c0_5, %c0_6] : memref<1x16xf32, #tpu.memory_space<vmem>>, vector<1x16xf32>
    %8 = vector.broadcast %7 : vector<1x16xf32> to vector<64x16xf32>
    %9 = arith.addf %6, %8 : vector<64x16xf32>
    %10 = math.tanh %9 : vector<64x16xf32>
    %11 = vector.shape_cast %10 : vector<64x16xf32> to vector<8x8x16xf32>
    %c0_7 = arith.constant 0 : index
    %c0_8 = arith.constant 0 : index
    %12 = vector.load %arg6[%c0_7, %c0_8] : memref<1x16xf32, #tpu.memory_space<vmem>>, vector<1x16xf32>
    %13 = vector.shape_cast %12 : vector<1x16xf32> to vector<1x1x16xf32>
    %14 = vector.broadcast %13 : vector<1x1x16xf32> to vector<8x8x16xf32>
    %15 = arith.mulf %11, %14 : vector<8x8x16xf32>
    %cst_9 = arith.constant dense<0.000000e+00> : vector<8x8xf32>
    %16 = vector.multi_reduction <add>, %15, %cst_9 [2] : vector<8x8x16xf32> to vector<8x8xf32>
    %c0_10 = arith.constant 0 : index
    %c0_11 = arith.constant 0 : index
    %17 = memref.load %arg7[%c0_10, %c0_11] : memref<1x1xf32, #tpu.memory_space<smem>>
    %18 = vector.broadcast %17 : f32 to vector<8x8xf32>
    %19 = arith.addf %16, %18 : vector<8x8xf32>
    %20 = arith.negf %19 : vector<8x8xf32>
    %21 = math.exp %20 : vector<8x8xf32>
    %cst_12 = arith.constant 1.000000e+00 : f32
    %22 = vector.broadcast %cst_12 : f32 to vector<8x8xf32>
    %23 = arith.addf %22, %21 : vector<8x8xf32>
    %24 = arith.divf %22, %23 : vector<8x8xf32>
    %c0_13 = arith.constant 0 : index
    %c0_14 = arith.constant 0 : index
    %25 = vector.load %arg9[%c0_13, %c0_14] : memref<8x8xf32, #tpu.memory_space<vmem>>, vector<8x8xf32>
    tpu.vector_store %arg9[%c0_13, %c0_14], %24 {strides = array<i32>} : memref<8x8xf32, #tpu.memory_space<vmem>>, vector<8x8xf32>,
    %c0_15 = arith.constant 0 : index
    %c0_16 = arith.constant 0 : index
    %26 = vector.load %arg11[%c0_15, %c0_16] : memref<8x1xf32, #tpu.memory_space<vmem>>, vector<8x1xf32>
    %cst_17 = arith.constant dense<0.000000e+00> : vector<8xf32>
    %27 = vector.multi_reduction <add>, %24, %cst_17 [1] : vector<8x8xf32> to vector<8xf32>
    %28 = vector.shape_cast %27 : vector<8xf32> to vector<8x1xf32>
    %29 = arith.addf %26, %28 : vector<8x1xf32>
    %c0_18 = arith.constant 0 : index
    %c0_19 = arith.constant 0 : index
    %30 = vector.load %arg11[%c0_18, %c0_19] : memref<8x1xf32, #tpu.memory_space<vmem>>, vector<8x1xf32>
    tpu.vector_store %arg11[%c0_18, %c0_19], %29 {strides = array<i32>} : memref<8x1xf32, #tpu.memory_space<vmem>>, vector<8x1xf32>,
    %c0_20 = arith.constant 0 : index
    %c0_21 = arith.constant 0 : index
    %31 = vector.load %arg10[%c0_20, %c0_21] : memref<8x32xf32, #tpu.memory_space<vmem>>, vector<8x32xf32>
    %32 = vector.shape_cast %24 : vector<8x8xf32> to vector<8x8x1xf32>
    %c0_22 = arith.constant 0 : index
    %c0_23 = arith.constant 0 : index
    %c0_24 = arith.constant 0 : index
    %33 = vector.load %arg3[%c0_22, %c0_23, %c0_24] : memref<8x8x32xf32, #tpu.memory_space<vmem>>, vector<8x8x32xf32>
    %34 = vector.broadcast %32 : vector<8x8x1xf32> to vector<8x8x32xf32>
    %35 = arith.mulf %34, %33 : vector<8x8x32xf32>
    %cst_25 = arith.constant dense<0.000000e+00> : vector<8x32xf32>
    %36 = vector.multi_reduction <add>, %35, %cst_25 [1] : vector<8x8x32xf32> to vector<8x32xf32>
    %37 = arith.addf %31, %36 : vector<8x32xf32>
    %c0_26 = arith.constant 0 : index
    %c0_27 = arith.constant 0 : index
    %38 = vector.load %arg10[%c0_26, %c0_27] : memref<8x32xf32, #tpu.memory_space<vmem>>, vector<8x32xf32>
    tpu.vector_store %arg10[%c0_26, %c0_27], %37 {strides = array<i32>} : memref<8x32xf32, #tpu.memory_space<vmem>>, vector<8x32xf32>,
    %c0_i32_28 = arith.constant 0 : i32
    %39 = arith.cmpi eq, %arg1, %c0_i32_28 : i32
    %40 = arith.extui %39 : i1 to i32
    %c0_i32_29 = arith.constant 0 : i32
    %41 = arith.cmpi ne, %40, %c0_i32_29 : i32
    scf.if %41 {
      %c0_30 = arith.constant 0 : index
      %c0_31 = arith.constant 0 : index
      %42 = vector.load %arg10[%c0_30, %c0_31] : memref<8x32xf32, #tpu.memory_space<vmem>>, vector<8x32xf32>
      %c0_32 = arith.constant 0 : index
      %c0_33 = arith.constant 0 : index
      %43 = vector.load %arg11[%c0_32, %c0_33] : memref<8x1xf32, #tpu.memory_space<vmem>>, vector<8x1xf32>
      %44 = vector.broadcast %43 : vector<8x1xf32> to vector<8x32xf32>
      %45 = arith.divf %42, %44 : vector<8x32xf32>
      %c0_34 = arith.constant 0 : index
      %c0_35 = arith.constant 0 : index
      %46 = vector.load %arg8[%c0_34, %c0_35] : memref<8x32xf32, #tpu.memory_space<vmem>>, vector<8x32xf32>
      tpu.vector_store %arg8[%c0_34, %c0_35], %45 {strides = array<i32>} : memref<8x32xf32, #tpu.memory_space<vmem>>, vector<8x32xf32>,
    } else {
    }
    return
  }
  func.func @transform_0(%arg0: i32, %arg1: i32) -> (i32, i32, i32) {
    %c0_i32 = arith.constant 0 : i32
    %c0_i32_0 = arith.constant 0 : i32
    return %arg0, %arg1, %c0_i32 : i32, i32, i32
  }
  func.func @transform_1(%arg0: i32, %arg1: i32) -> (i32, i32, i32) {
    %c0_i32 = arith.constant 0 : i32
    %c0_i32_0 = arith.constant 0 : i32
    return %arg0, %arg1, %c0_i32 : i32, i32, i32
  }
  func.func @transform_2(%arg0: i32, %arg1: i32) -> (i32, i32) {
    %c0_i32 = arith.constant 0 : i32
    %c0_i32_0 = arith.constant 0 : i32
    %c0_i32_1 = arith.constant 0 : i32
    return %c0_i32, %c0_i32_0 : i32, i32
  }
  func.func @transform_3(%arg0: i32, %arg1: i32) -> (i32, i32) {
    %c0_i32 = arith.constant 0 : i32
    %c0_i32_0 = arith.constant 0 : i32
    %c0_i32_1 = arith.constant 0 : i32
    return %c0_i32, %c0_i32_0 : i32, i32
  }
  func.func @transform_4(%arg0: i32, %arg1: i32) -> (i32, i32) {
    %c0_i32 = arith.constant 0 : i32
    %c0_i32_0 = arith.constant 0 : i32
    %c0_i32_1 = arith.constant 0 : i32
    return %c0_i32, %c0_i32_0 : i32, i32
  }
  func.func @transform_5(%arg0: i32, %arg1: i32) -> (i32, i32) {
    %c0_i32 = arith.constant 0 : i32
    %c0_i32_0 = arith.constant 0 : i32
    %c0_i32_1 = arith.constant 0 : i32
    return %c0_i32, %c0_i32_0 : i32, i32
  }
  func.func @transform_6(%arg0: i32, %arg1: i32) -> (i32, i32) {
    %c0_i32 = arith.constant 0 : i32
    %c0_i32_0 = arith.constant 0 : i32
    return %arg0, %c0_i32 : i32, i32
  }
  func.func @transform_7(%arg0: i32, %arg1: i32) -> (i32, i32) {
    %c0_i32 = arith.constant 0 : i32
    return %arg0, %arg1 : i32, i32
  }
}

</mosaic_0001>

<bundles_post_ra>
// kernel: tpu_custom_call.1
= control target key start
LH: loop header
LB: loop body
LE: loop exit
PB: predicated region body
PF: predicated region fallthrough
CT: control target
= control target key end

     0   :  { %s1712_s0 = inlined_call_operand.hbm [shape: f32[16,8,32], index: 0, kind: input, shape index: {}]   ;;  %s1713_s1 = inlined_call_operand.hbm [shape: f32[16,8,32], index: 1, kind: input, shape index: {}]   ;;  %s1714_s2 = inlined_call_operand.vmem [shape: f32[32,16], index: 2, kind: input, shape index: {}]   ;;  %s1715_s3 = inlined_call_operand.vmem [shape: f32[1,16], index: 3, kind: input, shape index: {}]   ;;  %s1716_s4 = inlined_call_operand.vmem [shape: f32[1,16], index: 4, kind: input, shape index: {}]   ;;  %s1717_s5 = inlined_call_operand.<no memory space> [shape: f32[1,1], index: 5, kind: input, shape index: {}]   ;;  %s1718_s6 = inlined_call_operand.hbm [shape: f32[16,32], index: 6, kind: output, shape index: {0}]   ;;  %s1719_s7 = inlined_call_operand.vmem [shape: f32[16,8], index: 7, kind: output, shape index: {1}]  }
   0x1   :  { %1725 = sst [smem:[#allocation15_spill]] %s1712_s0 }
   0x2   :  { %13 = sst [smem:[#allocation4]] %s1717_s5 }
   0x3   :  { %14 = vsyncpa [#allocation6], 0 }
   0x4   :  { %16 = vsyncpa [#allocation6 + $0x1], 0 }
   0x5   :  { %17 = vsyncpa [#allocation9], 0 }
   0x6   :  { %19 = vsyncpa [#allocation9 + $0x1], 0 }
   0x7   :  { %20 = vsyncpa [#allocation7], 0 }
   0x8   :  { %22 = vsyncpa [#allocation7 + $0x1], 0  ;;  %s1374_s26 = smov 0   ;;  %s1376_s27 = smov 0  }
   0x9   :  { %s1378_s28 = smov 0   ;;  %s1380_s29 = smov 0  }
   0xa   :  { %s1382_s30 = smov 0   ;;  %s1384_s8 = smov 0  }
   0xb LB: > { %s970_s5 = sadd.s32 4294967295, %s1322_s8   ;;  %s971_s9 = sadd.s32 4294967294, %s1322_s8   ;;  %s1322_s8 = sphi %s1384_s8, %s28_s8   ;;  %s1318_s30 = sphi %s1382_s30, %s1746_s30   ;;  %s1314_s29 = sphi %s1380_s29, %s1745_s29   ;;  %s1310_s28 = sphi %s1378_s28, %s1744_s28   ;;  %s1306_s27 = sphi %s1376_s27, %s1743_s27   ;;  %s1302_s26 = sphi %s1374_s26, %s1742_s26  }
   0xc   : > { %s40_s10 = sadd.s32 1, %s1318_s30  ;;  %s49_s11 = sadd.s32 1, %s1310_s28 }
   0xd   : > { %p42_p0 = scmp.ge.s32.totalorder %s40_s10, 2  ;;  %p56_p1 = scmp.ne.s32.totalorder %s1310_s28, %s1306_s27 }
   0xe   : > { %p57_p2 = scmp.eq.s32.totalorder %s1322_s8, 0  ;;  %p62_p3 = scmp.ne.s32.totalorder %s1306_s27, %s1302_s26 }
   0xf   : > { %s1748_s10 = smov (%p42_p0, %s40_s10), 0  ;;  %p63_p5 = scmp.eq.s32.totalorder %s970_s5, 0 }
  0x10   : > { %1726 = sst [smem:[#allocation14_spill]] %s1748_s10  ;;  %p1415_p4 = por %p57_p2, %p56_p1 }
  0x11   : > { %s44_s13 = ssub.s32 %s1318_s30, %s1748_s10  ;;  %p198_p6 = scmp.eq.s32.totalorder %s970_s5, 1 }
  0x12   : > { %p47_p7 = scmp.eq.s32.totalorder %s44_s13, 0  ;;  %p1421_p8 = por %p63_p5, %p62_p3 }
  0x13   : > { %p1425_p9 = por %p198_p6, %p56_p1  ;;  %p204_p10 = scmp.eq.s32.totalorder %s971_s9, 1 }
  0x14   : > { %s1728_s14 = scalar_select %p1421_p8, 1, 0 }
  0x15   : > { %s1729_s15 = scalar_select %p1425_p9, 1, 0 }
  0x16   : > { %s1430_s16 = scalar_select %p47_p7, %s1310_s28, %s49_s11  }
  0x17   : > { %p1432_p11 = por %p204_p10, %p62_p3  ;;  %p1070_p13 = scmp.lt.s32.totalorder %s1322_s8, 2 }
  0x18   : > { %s1439_s18 = sand.u32 1, %s1310_s28   ;;  %s1007_s20 = sshll.u32 %s1318_s30, 10 }
  0x19   : > { %s1730_s17 = scalar_select %p1432_p11, 1, 0 }
  0x1a   : > { %s1720_s19 = sshll.u32 %s1439_s18, 6  ;;  %s1731_s0 = sld [smem:[#allocation15_spill]] }
  0x1b   : > { %s268_s24 = scalar_lea.vmem [#allocation5], %s1720_s19  ;;  %p1456_p0 = pnand %p1070_p13, %p1415_p4 }
  0x1c   : > { %s276_s25 = sshll.u32 %s268_s24, 4  ;;  %s265_s9 = scalar_lea.sflag [#allocation6], %s1439_s18  ;;  %s1452_s25 = int_to_ptr.vmem [resolvable:$true] %s276_s25 }
  0x1d   : > { %p1178_p3 = pneg %p1456_p0 }
  0x20   : > { %s1448_s23 = scalar_lea.hbm %s1731_s0, %s1007_s20  ;;  %s1181_s12 = scalar_lea.hbm %s1731_s0, 2048 }
  0x21   : > { %s1176_s11 = scalar_lea.hbm %s1448_s23, 1024  ;;  %p1182_p4 = scmp.lt.u32.totalorder %s1448_s23, %s1731_s0 }
  0x22   : > { %p1177_p2 = scmp.ne.s32.totalorder %s1448_s23, %s1176_s11  ;;  %p1183_p7 = scmp.lt.u32.totalorder %s1181_s12, %s1176_s11 }
  0x23   : > { %p1185_p13 = scmp.lt.u32.totalorder %s1176_s11, %s1448_s23 }
  0x24   : > { %p1179_p5 = pnand %p1178_p3, %p1177_p2  ;;  %p1184_p10 = por %p1183_p7, %p1182_p4 }
  0x26   : > { %p1180_p6 = pneg %p1179_p5  ;;  %p1186_p12 = por %p1185_p13, %p1184_p10 }
  0x28   : > { %p1187_p1 = pnand %p1186_p12, %p1180_p6 }
  0x2a   : > { %1190 = shalt.err (!%p1187_p1)
}
  0x2b   : > { %s1191_s19 = scalar_lea.vmem %s1452_s25, 1024  ;;  %s1324_s13 = smov [#allocation5]  }
  0x2c   : > { %p1192_p2 = scmp.ne.s32.totalorder %s1452_s25, %s1191_s19  ;;  %s1196_s21 = sshll.u32 %s1324_s13, 4  ;;  %s1197_s21 = int_to_ptr.vmem [resolvable:$false] %s1196_s21 }
  0x2d   : > { %s1198_s22 = scalar_lea.vmem %s1197_s21, 2048  ;;  %p1199_p9 = scmp.lt.s32.totalorder %s1452_s25, %s1197_s21 }
  0x2e   : > { %p1194_p5 = pnand %p1192_p2, %p1178_p3  ;;  %p1200_p4 = scmp.lt.s32.totalorder %s1198_s22, %s1191_s19 }
  0x30   : > { %p1195_p11 = pneg %p1194_p5  ;;  %p1201_p7 = por %p1200_p4, %p1199_p9 }
  0x32   : > { %p1202_p10 = pnand %p1201_p7, %p1195_p11 }
  0x34   : > { %1205 = shalt.err (!%p1202_p10)
}
  0x35   : > { %s1723_s11 = smov 128   ;;  %s1326_s12 = smov 8  }
  0x36   : > { %1062 = dma.hbm_to_vmem [thread:$0]  (!%p1456_p0), %s1448_s23, 1024, %s1452_s25, %s265_s9, %s1723_s11, %s1723_s11, %s1326_s12  }
  0x37   : > { %p306_p9 = scmp.lt.s32.totalorder %s1322_s8, 3  ;;  %s1498_s13 = scalar_lea.hbm %s1713_s1, %s1007_s20 }
  0x38   : > { %p1733_p11 = scmp.ge.s32.totalorder %s1322_s8, 1  ;;  %s1735_s22 = sshll.u32 %s1439_s18, 6 }
  0x39   : > { %s290_s0 = scalar_lea.vmem [#allocation8], %s1735_s22  ;;  %s287_s23 = scalar_lea.sflag [#allocation9], %s1439_s18 }
  0x3a   : > { %p1502_p12 = pnand %p1733_p11, %p306_p9  ;;  %s298_s10 = sshll.u32 %s290_s0, 4  ;;  %s1508_s10 = int_to_ptr.vmem [resolvable:$true] %s298_s10 }
  0x3b   : > { %s1206_s25 = scalar_lea.hbm %s1498_s13, 1024  ;;  %s1211_s19 = scalar_lea.hbm %s1713_s1, 2048 }
  0x3c   : > { %p1207_p1 = scmp.ne.s32.totalorder %s1498_s13, %s1206_s25  ;;  %p1212_p2 = scmp.lt.u32.totalorder %s1498_s13, %s1713_s1 }
  0x3d   : > { %p1213_p5 = scmp.lt.u32.totalorder %s1211_s19, %s1206_s25  ;;  %p1215_p7 = scmp.lt.u32.totalorder %s1206_s25, %s1498_s13 }
  0x3e   : > { %p1209_p6 = pnand %p1207_p1, %p1178_p3 }
  0x3f   : > { %p1214_p4 = por %p1213_p5, %p1212_p2 }
  0x40   : > { %p1210_p13 = pneg %p1209_p6 }
  0x41   : > { %p1216_p10 = por %p1215_p7, %p1214_p4 }
  0x43   : > { %p1217_p9 = pnand %p1216_p10, %p1210_p13 }
  0x45   : > { %1220 = shalt.err (!%p1217_p9)
}
  0x46   : > { %s1221_s0 = scalar_lea.vmem %s1508_s10, 1024  ;;  %s1327_s22 = smov [#allocation8]  }
  0x47   : > { %p1222_p11 = scmp.ne.s32.totalorder %s1508_s10, %s1221_s0  ;;  %s1226_s20 = sshll.u32 %s1327_s22, 4  ;;  %s1227_s20 = int_to_ptr.vmem [resolvable:$false] %s1226_s20 }
  0x48   : > { %s1228_s11 = scalar_lea.vmem %s1227_s20, 2048  ;;  %p1229_p8 = scmp.lt.s32.totalorder %s1508_s10, %s1227_s20 }
  0x49   : > { %p1224_p1 = pnand %p1222_p11, %p1178_p3  ;;  %p1230_p2 = scmp.lt.s32.totalorder %s1228_s11, %s1221_s0 }
  0x4b   : > { %p1225_p6 = pneg %p1224_p1  ;;  %p1231_p5 = por %p1230_p2, %p1229_p8 }
  0x4d   : > { %p1232_p4 = pnand %p1231_p5, %p1225_p6 }
  0x4f   : > { %1235 = shalt.err (!%p1232_p4)
}
  0x50   : > { %s1736_s25 = smov 128   ;;  %310 = sbr.rel (%p1502_p12) target bundleno = 827 (0x33b), region = 44 }
  0x51   : > { %1065 = dma.hbm_to_vmem [thread:$0]  (!%p1456_p0), %s1498_s13, 1024, %s1508_s10, %s287_s23, %s1736_s25, %s1736_s25, %s1326_s12  }
  0x52   : > { %s1542_s9 = sand.u32 (!%p1502_p12), 1, %s1306_s27   ;;  %p1737_p8 = scmp.ne.s32.totalorder (!%p1502_p12), %s1728_s14, 0 }
  0x53   : > { %s981_s19 = sshll.u32 (!%p1502_p12), %s1542_s9, 6  ;;  %s313_s24 = scalar_lea.sflag (!%p1502_p12), [#allocation6], %s1542_s9 }
  0x54   : > { %s1546_s5 = scalar_lea.vmem (!%p1502_p12), [#allocation5], %s981_s19 }
  0x57   : > { %1289 = dma.done.wait (%p1737_p8), %s313_s24, 1024  }
  0x58   : > { %1291 = vsyncadd (%p1737_p8), %s313_s24, 4294966272  ;;  %s322_s10 = scalar_lea.sflag [#allocation9], %s1542_s9  ;;  %s1553_s18 = scalar_lea.vmem [#allocation8], %s981_s19 }
  0x59   : > { %1293 = dma.done.wait (%p1737_p8), %s322_s10, 1024  }
  0x5a   : > { %1295 = vsyncadd (%p1737_p8), %s322_s10, 4294966272  ;;  %vm381_vm0 = vcmask 261120   ;;  %v393_v0 = vld [vmem:[%s1714_s2] sm:$0xff]  ;;  %v394_v1 = vld [vmem:[%s1714_s2 + $0x8] sm:$0xff]  ;;  %vm557_vm1 = vcmask 130048   ;;  %v1328_v56 = vmov 0.0  }
  0x5b   : > { %v395_v2 = vld [vmem:[%s1714_s2 + $0x10] sm:$0xff]  ;;  %v1041_v3 = vpack.c.bf16 %v394_v1, %v393_v0  ;;  %v396_v4 = vld [vmem:[%s1714_s2 + $0x18] sm:$0xff]  ;;  %v387_v10 = vld [vmem:[%s1546_s5 + $0x10] sm:$0xff]  ;;  %382 = vst.msk [vmem:[#allocation2] sm:$0xff] %vm381_vm0, %v1328_v56  ;;  %vm383_vm2 = vcmask 7168   ;;  %vm682_vm3 = vcmask 1041409  }
  0x5c   : > { %v385_v5 = vld [vmem:[%s1546_s5] sm:$0xff]  ;;  %v1045_v6 = vpack.c.bf16 %v396_v4, %v395_v2  ;;  %v386_v8 = vld [vmem:[%s1546_s5 + $0x8] sm:$0xff]  ;;  %v391_v11 = vld [vmem:[%s1546_s5 + $0x30] sm:$0xff]  ;;  %384 = vst.msk [vmem:[#allocation3] sm:$0xff] %vm383_vm2, %v1328_v56  ;;  %vm684_vm4 = vcmask 1042434   ;;  %p370_p0 = scmp.lt.s32.totalorder %s1314_s29, 1 }
  0x5d   : > { %1029 = vmatprep.mubr.msk.f32.mxu0 %vm381_vm0, %v385_v5  ;;  %1042 = vmatprep.subr.bf16.mxu0 %v1041_v3  ;;  %v389_v7 = vld [vmem:[%s1546_s5 + $0x20] sm:$0xff]  ;;  %v390_v9 = vld [vmem:[%s1546_s5 + $0x28] sm:$0xff]  ;;  %v388_v12 = vld [vmem:[%s1546_s5 + $0x18] sm:$0xff]  ;;  %vm686_vm5 = vcmask 1043459   ;;  %vm688_vm6 = vcmask 1044484   ;;  %vm690_vm7 = vcmask 1045509  }
  0x5e   : > { %1049 = vmatprep.subr.bf16.mxu1 %v1041_v3  ;;  %1044 = vmatpush3.bf16.msra.mxu0 %v1041_v3  ;;  %v392_v13 = vld [vmem:[%s1546_s5 + $0x38] sm:$0xff]  ;;  %v985_v14 = vld [vmem:[%s1715_s3] ss:$0 sm:$0xff]  ;;  %s582_s5 = sld [smem:[#allocation4]]  ;;  %vm692_vm8 = vcmask 1046534   ;;  %vm694_vm9 = vcmask 1047559  }
  0x5f   : > { %1051 = vmatpush3.bf16.msra.mxu1 %v1041_v3  ;;  %1046 = vmatprep.subr.bf16.mxu0 %v1045_v6  ;;  %v994_v31 = vld [vmem:[%s1716_s4] ss:$0 sm:$0xff]  ;;  %vm697_vm10 = vcmask 64512   ;;  %s1623_s10 = scalar_select %p370_p0, %s1314_s29, 1 }
  0x60   : > { %1050 = vmatprep.subr.bf16.mxu1 %v1045_v6  ;;  %1035 = vmatprep.mubr.msk.f32.mxu1 %vm381_vm0, %v389_v7  ;;  %s983_s23 = sshll.u32 %s1542_s9, 3  ;;  %s1004_s0 = sshll.u32 %s1314_s29, 7 }
  0x61   : > { %s984_s12 = sshll.u32 %s1623_s10, 3  ;;  %s358_s22 = scalar_lea.vmem [#allocation10], %s983_s23 }
  0x62   : > { %1048 = vmatpush3.bf16.msra.mxu0 %v1045_v6  ;;  %s376_s21 = scalar_lea.vmem %s1719_s7, %s984_s12  ;;  %s831_s20 = sshll.u32 %s358_s22, 4  ;;  %s1664_s20 = int_to_ptr.vmem [resolvable:$true] %s831_s20 }
  0x63   : > { %1052 = vmatpush3.bf16.msra.mxu1 %v1045_v6  ;;  %s1662_s25 = scalar_lea.hbm %s1718_s6, %s1004_s0  ;;  %s811_s19 = scalar_lea.sflag [#allocation7], %s1542_s9 }
  0x64   : > { %v583_v57 = vstv %s582_s5  ;;  %s1236_s24 = scalar_lea.vmem %s1664_s20, 128  ;;  %p1738_p12 = scmp.ne.s32.totalorder %s1729_s15, 0 }
  0x65   : > { %1030 = vmatmul.mubr.msk.f32.vlgmr.msra.gmra.mrb[0].mxu0 %vm381_vm0, %v386_v8  ;;  %p1237_p3 = scmp.ne.s32.totalorder %s1664_s20, %s1236_s24  ;;  %s1330_s29 = smov [#allocation10]  }
  0x66   : > { %1036 = vmatmul.mubr.msk.f32.vlgmr.msra.gmra.mrb[0].mxu1 %vm381_vm0, %v390_v9  ;;  %1032 = vmatprep.mubr.msk.f32.mxu0 %vm381_vm0, %v387_v10  ;;  %s1240_s5 = sshll.u32 %s1330_s29, 4  ;;  %s1241_s5 = int_to_ptr.vmem [resolvable:$false] %s1240_s5 }
  0x67   : > { %1038 = vmatprep.mubr.msk.f32.mxu1 %vm381_vm0, %v391_v11  ;;  %p1238_p13 = pnand %p1237_p3, %p1738_p12  ;;  %s1242_s10 = scalar_lea.vmem %s1241_s5, 256 }
  0x68   : > { %p1243_p10 = scmp.lt.s32.totalorder %s1664_s20, %s1241_s5  ;;  %p1244_p9 = scmp.lt.s32.totalorder %s1242_s10, %s1236_s24 }
  0x69   : > { %1033 = vmatmul.mubr.msk.f32.gmra.mrb[2].mxu0 %vm381_vm0, %v388_v12  ;;  %p1239_p7 = pneg %p1238_p13 }
  0x6a   : > { %1039 = vmatmul.mubr.msk.f32.gmra.mrb[2].mxu1 %vm381_vm0, %v392_v13  ;;  %p1245_p11 = por %p1244_p9, %p1243_p10 }
  0x6c   : > { %p1246_p1 = pnand %p1245_p11, %p1239_p7 }
 0x138   : > { %v1031_v15 = vpop.f32.mrb[0].mxu0 }
 0x139   : > { %v1037_v16 = vpop.f32.mrb[0].mxu1  ;;  %v501_v17 = vadd.f32 %v1031_v15, %v985_v14  ;;  %v495_v18 = vpop.f32.mrb[1].mxu0 }
 0x13a   : > { %v515_v19 = vpop.f32.mrb[1].mxu1  ;;  %v496_v20 = vadd.f32 %v985_v14, %v495_v18  ;;  %v521_v29 = vadd.f32 %v1037_v16, %v985_v14 }
 0x13b   : > { %v516_v21 = vadd.f32 %v985_v14, %v515_v19  ;;  %1126 = vtanh.f32 %v501_v17 }
 0x13c   : > { %1128 = vtanh.f32 %v496_v20  ;;  %v1034_v22 = vpop.f32.mrb[2].mxu0 }
 0x13d   : > { %v1040_v23 = vpop.f32.mrb[2].mxu1  ;;  %v511_v24 = vadd.f32 %v1034_v22, %v985_v14  ;;  %v505_v25 = vpop.f32.mrb[3].mxu0  ;;  %1130 = vtanh.f32 %v516_v21 }
 0x13e   : > { %v525_v26 = vpop.f32.mrb[3].mxu1  ;;  %v506_v27 = vadd.f32 %v985_v14, %v505_v25  ;;  %v531_v30 = vadd.f32 %v1040_v23, %v985_v14 }
 0x13f   : > { %v526_v28 = vadd.f32 %v985_v14, %v525_v26  ;;  %1132 = vtanh.f32 %v511_v24  ;;  %v648_v26 = vlaneseq }
 0x140   : > { %1134 = vtanh.f32 %v506_v27 }
 0x141   : > { %1136 = vtanh.f32 %v526_v28 }
 0x142   : > { %1138 = vtanh.f32 %v521_v29  ;;  %v708_v29 = vld [vmem:[%s1553_s18 + $0x8] sm:$0xff] }
 0x143   : > { %1140 = vtanh.f32 %v531_v30 }
 0x145   : > { %v1127_v32 = vpop.eup %1126 }
 0x146   : > { %v1129_v33 = vpop.eup %1128  ;;  %v550_v34 = vmul.f32 %v1127_v32, %v994_v31  ;;  %v649_v32 = vand.u32 127, %v648_v26 }
 0x147   : > { %v1131_v35 = vpop.eup %1130  ;;  %v549_v37 = vmul.f32 %v1129_v33, %v994_v31  ;;  %v651_v33 = vshrl.u32 %v648_v26, 7 }
 0x148   : > { %v561_v36 = vsel %vm557_vm1, %v550_v34, 0.0  ;;  %v553_v41 = vmul.f32 %v1131_v35, %v994_v31 }
 0x149   : > { %v1133_v38 = vpop.eup %1132  ;;  %562 = vadd.xlane.f32.xlu0 %v561_v36  ;;  %v558_v44 = vsel %vm557_vm1, %v549_v37, 0.0  ;;  %v710_v37 = vld [vmem:[%s1553_s18 + $0x18] sm:$0xff] }
 0x14a   : > { %v1135_v39 = vpop.eup %1134  ;;  %v552_v40 = vmul.f32 %v1133_v38, %v994_v31  ;;  %v570_v47 = vsel %vm557_vm1, %v553_v41, 0.0  ;;  %v707_v41 = vld [vmem:[%s1553_s18] sm:$0xff] }
 0x14b   : > { %v1137_v42 = vpop.eup %1136  ;;  %v551_v45 = vmul.f32 %v1135_v39, %v994_v31 }
 0x14c   : > { %v567_v43 = vsel %vm557_vm1, %v552_v40, 0.0  ;;  %v1139_v46 = vpop.eup %1138  ;;  %v555_v48 = vmul.f32 %v1137_v42, %v994_v31 }
 0x14d   : > { %568 = vadd.xlane.f32.xlu1 %v567_v43  ;;  %559 = vadd.xlane.f32.xlu0 %v558_v44  ;;  %v564_v49 = vsel %vm557_vm1, %v551_v45, 0.0  ;;  %v554_v50 = vmul.f32 %v1139_v46, %v994_v31  ;;  %v1141_v51 = vpop.eup %1140  ;;  %v1607_v43 = vsub.s32 %v649_v32, %v651_v33 }
 0x14e   : > { %v576_v52 = vsel %vm557_vm1, %v555_v48, 0.0  ;;  %v556_v54 = vmul.f32 %v1141_v51, %v994_v31  ;;  %v709_v51 = vld [vmem:[%s1553_s18 + $0x10] sm:$0xff] }
 0x14f   : > { %v573_v53 = vsel %vm557_vm1, %v554_v50, 0.0 }
 0x150   : > { %v579_v55 = vsel %vm557_vm1, %v556_v54, 0.0 }
 0x151   : > { %565 = vadd.xlane.f32.xlu1 %v564_v49  ;;  %571 = vadd.xlane.f32.xlu0 %v570_v47 }
 0x155   : > { %574 = vadd.xlane.f32.xlu1 %v573_v53  ;;  %577 = vadd.xlane.f32.xlu0 %v576_v52  ;;  %v711_v53 = vld [vmem:[%s1553_s18 + $0x20] sm:$0xff] }
 0x159   : > { %580 = vadd.xlane.f32.xlu1 %v579_v55 }
 0x1d6   : > { %v563_v58 = vpop.xlane.xlu0 %562 }
 0x1d7   : > { %v585_v59 = vadd.f32 %v583_v57, %v563_v58 }
 0x1d9   : > { %v996_v60 = vmul.f32 -1.442695, %v585_v59 }
 0x1da   : > { %v569_v61 = vpop.xlane.xlu1 %568  ;;  %v560_v62 = vpop.xlane.xlu0 %559 }
 0x1db   : > { %1142 = vpow2.f32 %v996_v60  ;;  %v587_v63 = vadd.f32 %v583_v57, %v569_v61  ;;  %v584_v0 = vadd.f32 %v583_v57, %v560_v62 }
 0x1dd   : > { %v998_v1 = vmul.f32 -1.442695, %v587_v63  ;;  %v995_v2 = vmul.f32 -1.442695, %v584_v0 }
 0x1de   : > { %v566_v3 = vpop.xlane.xlu1 %565  ;;  %v572_v4 = vpop.xlane.xlu0 %571 }
 0x1df   : > { %1144 = vpow2.f32 %v998_v1  ;;  %v586_v5 = vadd.f32 %v583_v57, %v566_v3  ;;  %v588_v6 = vadd.f32 %v583_v57, %v572_v4 }
 0x1e0   : > { %1146 = vpow2.f32 %v995_v2  ;;  %v712_v2 = vld [vmem:[%s1553_s18 + $0x28] sm:$0xff] }
 0x1e1   : > { %v997_v7 = vmul.f32 -1.442695, %v586_v5  ;;  %v999_v8 = vmul.f32 -1.442695, %v588_v6 }
 0x1e2   : > { %v575_v9 = vpop.xlane.xlu1 %574  ;;  %v578_v10 = vpop.xlane.xlu0 %577 }
 0x1e3   : > { %1148 = vpow2.f32 %v997_v7  ;;  %v589_v11 = vadd.f32 %v583_v57, %v575_v9  ;;  %v590_v12 = vadd.f32 %v583_v57, %v578_v10 }
 0x1e4   : > { %1150 = vpow2.f32 %v999_v8 }
 0x1e5   : > { %v1143_v13 = vpop.eup %1142  ;;  %v1000_v14 = vmul.f32 -1.442695, %v589_v11  ;;  %v1001_v15 = vmul.f32 -1.442695, %v590_v12  ;;  %v713_v12 = vld [vmem:[%s1553_s18 + $0x30] sm:$0xff] }
 0x1e6   : > { %v617_v16 = vadd.f32 1.0, %v1143_v13  ;;  %v581_v17 = vpop.xlane.xlu1 %580 }
 0x1e7   : > { %1152 = vpow2.f32 %v1000_v14  ;;  %v591_v18 = vadd.f32 %v583_v57, %v581_v17 }
 0x1e8   : > { %1154 = vrcp.f32 %v617_v16 }
 0x1e9   : > { %v1145_v19 = vpop.eup %1144  ;;  %1156 = vpow2.f32 %v1001_v15  ;;  %v1002_v20 = vmul.f32 -1.442695, %v591_v18 }
 0x1ea   : > { %v1147_v21 = vpop.eup %1146  ;;  %v619_v22 = vadd.f32 1.0, %v1145_v19 }
 0x1eb   : > { %v616_v23 = vadd.f32 1.0, %v1147_v21  ;;  %1158 = vpow2.f32 %v1002_v20  ;;  %v714_v21 = vld [vmem:[%s1553_s18 + $0x38] sm:$0xff] }
 0x1ec   : > { %1160 = vrcp.f32 %v619_v22 }
 0x1ed   : > { %v1149_v24 = vpop.eup %1148  ;;  %1162 = vrcp.f32 %v616_v23 }
 0x1ee   : > { %v1151_v25 = vpop.eup %1150  ;;  %v618_v27 = vadd.f32 1.0, %v1149_v24 }
 0x1ef   : > { %v620_v28 = vadd.f32 1.0, %v1151_v25 }
 0x1f0   : > { %1164 = vrcp.f32 %v618_v27 }
 0x1f1   : > { %v1153_v30 = vpop.eup %1152  ;;  %1166 = vrcp.f32 %v620_v28 }
 0x1f2   : > { %v1155_v31 = vpop.eup %1154  ;;  %v621_v34 = vadd.f32 1.0, %v1153_v30 }
 0x1f3   : > { %v1157_v35 = vpop.eup %1156  ;;  %v716_v36 = vmul.f32 %v1155_v31, %v708_v29  ;;  %v657_v55 = vrot.slane %v1155_v31, %v1607_v43 }
 0x1f4   : > { %1168 = vrcp.f32 %v621_v34  ;;  %v622_v38 = vadd.f32 1.0, %v1157_v35 }
 0x1f5   : > { %v1159_v39 = vpop.eup %1158  ;;  %v730_v40 = vsel %vm381_vm0, %v716_v36, 0.0 }
 0x1f6   : > { %v1161_v42 = vpop.eup %1160  ;;  %v731_v44 = vrot.slane %v730_v40, 4  ;;  %1170 = vrcp.f32 %v622_v38  ;;  %v623_v45 = vadd.f32 1.0, %v1159_v39 }
 0x1f7   : > { %v1163_v46 = vpop.eup %1162  ;;  %v718_v47 = vmul.f32 %v1161_v42, %v710_v37  ;;  %v665_v6 = vrot.slane %v1161_v42, %v1607_v43 }
 0x1f8   : > { %v732_v48 = vadd.f32 %v731_v44, %v730_v40  ;;  %v653_v49 = vrot.slane %v1163_v46, %v1607_v43  ;;  %v715_v50 = vmul.f32 %v1163_v46, %v707_v41  ;;  %1172 = vrcp.f32 %v623_v45 }
 0x1f9   : > { %v744_v52 = vsel %vm381_vm0, %v718_v47, 0.0 }
 0x1fa   : > { %v1165_v54 = vpop.eup %1164  ;;  %v733_v56 = vrot.slane %v732_v48, 2  ;;  %v745_v57 = vrot.slane %v744_v52, 4  ;;  %v723_v58 = vsel %vm381_vm0, %v715_v50, 0.0  ;;  %v683_v3 = vsel %vm682_vm3, %v657_v55, %v653_v49 }
 0x1fb   : > { %v1167_v59 = vpop.eup %1166  ;;  %v724_v60 = vrot.slane %v723_v58, 4  ;;  %v661_v61 = vrot.slane %v1165_v54, %v1607_v43  ;;  %v717_v62 = vmul.f32 %v1165_v54, %v709_v51 }
 0x1fc   : > { %v734_v63 = vadd.f32 %v733_v56, %v732_v48  ;;  %v746_v0 = vadd.f32 %v745_v57, %v744_v52  ;;  %v719_v1 = vmul.f32 %v1167_v59, %v711_v53  ;;  %v669_v13 = vrot.slane %v1167_v59, %v1607_v43 }
 0x1fd   : > { %v725_v4 = vadd.f32 %v724_v60, %v723_v58  ;;  %v737_v5 = vsel %vm381_vm0, %v717_v62, 0.0  ;;  %v685_v7 = vsel %vm684_vm4, %v661_v61, %v683_v3 }
 0x1fe   : > { %v1169_v8 = vpop.eup %1168  ;;  %v747_v9 = vrot.slane %v746_v0, 2  ;;  %v738_v10 = vrot.slane %v737_v5, 4  ;;  %v751_v11 = vsel %vm381_vm0, %v719_v1, 0.0  ;;  %v735_v14 = vrot.slane %v734_v63, 1 }
 0x1ff   : > { %v726_v15 = vrot.slane %v725_v4, 2  ;;  %v752_v16 = vrot.slane %v751_v11, 4  ;;  %v720_v17 = vmul.f32 %v1169_v8, %v712_v2  ;;  %v673_v22 = vrot.slane %v1169_v8, %v1607_v43 }
 0x200   : > { %v1171_v18 = vpop.eup %1170  ;;  %v748_v19 = vadd.f32 %v747_v9, %v746_v0  ;;  %v739_v20 = vadd.f32 %v738_v10, %v737_v5  ;;  %v687_v23 = vsel %vm686_vm5, %v665_v6, %v685_v7  ;;  %v736_v46 = vadd.f32 %v735_v14, %v734_v63 }
 0x201   : > { %v727_v24 = vadd.f32 %v726_v15, %v725_v4  ;;  %v753_v25 = vadd.f32 %v752_v16, %v751_v11  ;;  %v758_v26 = vsel %vm381_vm0, %v720_v17, 0.0  ;;  %v721_v27 = vmul.f32 %v1171_v18, %v713_v12  ;;  %v706_v11 = vld [vmem:[#allocation2] sm:$0xff]  ;;  %v699_v16 = vld [vmem:[#allocation3] sm:$0xff] }
 0x202   : > { %v1173_v28 = vpop.eup %1172  ;;  %v740_v29 = vrot.slane %v739_v20, 2  ;;  %v759_v30 = vrot.slane %v758_v26, 4  ;;  %v677_v31 = vrot.slane %v1171_v18, %v1607_v43  ;;  %v689_v32 = vsel %vm688_vm6, %v669_v13, %v687_v23 }
 0x203   : > { %v728_v33 = vrot.slane %v727_v24, 1  ;;  %v754_v34 = vrot.slane %v753_v25, 2  ;;  %v722_v35 = vmul.f32 %v1173_v28, %v714_v21  ;;  %v681_v36 = vrot.slane %v1173_v28, %v1607_v43 }
 0x204   : > { %v741_v37 = vadd.f32 %v740_v29, %v739_v20  ;;  %v760_v38 = vadd.f32 %v759_v30, %v758_v26  ;;  %v691_v39 = vsel %vm690_vm7, %v673_v22, %v689_v32  ;;  %v749_v40 = vrot.slane %v748_v19, 1 }
 0x205   : > { %v729_v41 = vadd.f32 %v728_v33, %v727_v24  ;;  %v693_v42 = vsel %vm692_vm8, %v677_v31, %v691_v39  ;;  %v755_v44 = vadd.f32 %v754_v34, %v753_v25  ;;  %v765_v45 = vsel %vm381_vm0, %v721_v27, 0.0 }
 0x206   : > { %v742_v47 = vrot.slane %v741_v37, 1  ;;  %v695_v48 = vsel %vm694_vm9, %v681_v36, %v693_v42  ;;  %v761_v43 = vrot.slane %v760_v38, 2  ;;  %v766_v51 = vrot.slane %v765_v45, 4 }
 0x207   : > { %v700_v49 = vsel %vm697_vm10, %v695_v48, 0.0  ;;  %v756_v50 = vrot.slane %v755_v44, 1  ;;  %v772_v52 = vsel %vm381_vm0, %v722_v35, 0.0  ;;  %698 = vst.msk [vmem:[%s376_s21] sm:$0xff] %vm697_vm10, %v695_v48  ;;  %v750_v56 = vadd.f32 %v749_v40, %v748_v19 }
 0x208   : > { %v743_v53 = vadd.f32 %v742_v47, %v741_v37  ;;  %v762_v54 = vadd.f32 %v761_v43, %v760_v38  ;;  %v773_v55 = vrot.slane %v772_v52, 4  ;;  %701 = vadd.xlane.f32.xlu0 %v700_v49  ;;  %v767_v57 = vadd.f32 %v766_v51, %v765_v45 }
 0x209   : > { %v787_v58 = vsel %vm682_vm3, %v736_v46, %v729_v41  ;;  %v757_v62 = vadd.f32 %v756_v50, %v755_v44  ;;  %v1329_v15 = vmov 0  }
 0x20a   : > { %v763_v59 = vrot.slane %v762_v54, 1  ;;  %v774_v60 = vadd.f32 %v773_v55, %v772_v52  ;;  %v788_v61 = vsel %vm684_vm4, %v743_v53, %v787_v58  ;;  %v768_v63 = vrot.slane %v767_v57, 2  ;;  %1124 = vset.pattern.permute.xlu1 %v1329_v15  ;;  %1125 = vset.pattern.permute.xlu0 %v1329_v15 }
 0x20b   : > { %v789_v0 = vsel %vm686_vm5, %v750_v56, %v788_v61 }
 0x20c   : > { %v764_v1 = vadd.f32 %v763_v59, %v762_v54  ;;  %v775_v2 = vrot.slane %v774_v60, 2  ;;  %v769_v3 = vadd.f32 %v768_v63, %v767_v57  ;;  %v790_v4 = vsel %vm688_vm6, %v757_v62, %v789_v0 }
 0x20e   : > { %v776_v5 = vadd.f32 %v775_v2, %v774_v60  ;;  %v770_v6 = vrot.slane %v769_v3, 1  ;;  %v791_v8 = vsel %vm690_vm7, %v764_v1, %v790_v4 }
 0x210   : > { %v777_v7 = vrot.slane %v776_v5, 1  ;;  %v771_v9 = vadd.f32 %v770_v6, %v769_v3 }
 0x212   : > { %v778_v10 = vadd.f32 %v777_v7, %v776_v5  ;;  %v792_v12 = vsel %vm692_vm8, %v771_v9, %v791_v8 }
 0x214   : > { %v793_v13 = vsel %vm694_vm9, %v778_v10, %v792_v12 }
 0x215   : > { %v795_v14 = vadd.f32 %v793_v13, %v706_v11 }
 0x217   : > { %796 = vst.msk [vmem:[#allocation2] sm:$0xff] %vm381_vm0, %v795_v14 }
 0x21e   : > { %v800_v22 = vld [vmem:[#allocation2] sm:$0xff] }
 0x295   : > { %v702_v17 = vpop.xlane.xlu0 %701 }
 0x296   : > { %v703_v18 = vadd.f32 %v702_v17, %v699_v16 }
 0x298   : > { %705 = vst.msk [vmem:[#allocation3] sm:$0xff] %vm383_vm2, %v703_v18 }
 0x29f   : > { %v801_v19 = vld [vmem:[#allocation3] sm:$0xff] }
 0x2a0   : > { %804 = vperm.xlu1 %1124, %v801_v19  }
 0x31f   : > { %v805_v20 = vpop.permute.xlu1 %804 }
 0x320   : > { %1174 = vrcp.f32 %v805_v20 }
 0x32a   : > { %v1175_v21 = vpop.eup %1174 }
 0x32b   : > { %v808_v23 = vmul.f32 %v1175_v21, %v800_v22 }
 0x32d   : > { %809 = vst.msk [vmem:[%s358_s22] sm:$0xff] %vm381_vm0, %v808_v23 }
 0x32e   : > { %1249 = shalt.err (!%p1246_p1)
}
 0x32f   : > { %s1250_s9 = scalar_lea.hbm %s1662_s25, 128  ;;  %s1254_s13 = scalar_lea.hbm %s1718_s6, 256 }
 0x330   : > { %p1251_p6 = scmp.ne.s32.totalorder %s1662_s25, %s1250_s9  ;;  %p1255_p4 = scmp.lt.u32.totalorder %s1662_s25, %s1718_s6 }
 0x331   : > { %p1256_p8 = scmp.lt.u32.totalorder %s1254_s13, %s1250_s9  ;;  %p1258_p3 = scmp.lt.u32.totalorder %s1250_s9, %s1662_s25 }
 0x332   : > { %p1252_p2 = pnand %p1251_p6, %p1738_p12 }
 0x333   : > { %p1257_p0 = por %p1256_p8, %p1255_p4 }
 0x334   : > { %p1253_p5 = pneg %p1252_p2 }
 0x335   : > { %p1259_p13 = por %p1258_p3, %p1257_p0 }
 0x337   : > { %p1260_p7 = pnand %p1259_p13, %p1253_p5 }
 0x339   : > { %1263 = shalt.err (!%p1260_p7)
}
 0x33a   : > { %1057 = dma.vmem_to_hbm [thread:$0]  (%p1738_p12), %s1664_s20, 128, %s1662_s25, %s811_s19  }
 0x33b PF: > { %s846_s0 = sand.u32 1, %s1302_s26   ;;  %p1739_p10 = scmp.ne.s32.totalorder %s1730_s17, 0 }
 0x33c   : > { %p1740_p9 = scmp.ge.s32.totalorder %s1322_s8, 2  ;;  %s847_s22 = scalar_lea.sflag [#allocation7], %s846_s0 }
 0x33e   : > { %p1067_p11 = pnand %p1740_p9, %p1739_p10 }
 0x340   : > { %1297 = dma.done.wait (!%p1067_p11), %s847_s22, 128  }
 0x341   : > { %1299 = vsyncadd (!%p1067_p11), %s847_s22, 4294967168  ;;  %s28_s8 = sadd.s32 1, %s1322_s8   ;;  %s1741_s15 = sld [smem:[#allocation14_spill]] }
 0x342   : > { %p25_p1 = scmp.ge.s32.totalorder %s28_s8, 4   ;;  %s1742_s26 = smov %s1306_s27 }
 0x343   : > { %s1743_s27 = smov %s1310_s28  ;;  %s1744_s28 = smov %s1430_s16 }
 0x344   : > { %s1745_s29 = smov %s1318_s30  ;;  %27 = sbr.rel (!%p25_p1) target bundleno = 11 (0xb), region = 122 }
 0x347   : > { %s1746_s30 = smov %s1741_s15 }
 0x34b   :  { %862 = vsyncpa [#allocation6], 1 }
 0x34c   :  { %864 = vsyncpa [#allocation6 + $0x1], 1 }
 0x34d   :  { %865 = vsyncpa [#allocation9], 1 }
 0x34e   :  { %867 = vsyncpa [#allocation9 + $0x1], 1 }
 0x34f   :  { %868 = vsyncpa [#allocation7], 1 }
 0x350   :  { %870 = vsyncpa [#allocation7 + $0x1], 1 }

</bundles_post_ra>
